<compile_context>
chip_gen: v7x
topology: tpu7x:2x2x1
jax: 0.10.0
libtpu: 0.0.40
codegen_flags: <defaults>
</compile_context>

<pallas_src>
import math

import jax
import jax.numpy as jnp
from jax.experimental import pallas as pl
from jax.experimental.pallas import tpu as pltpu


# --------------------------------------------------------------------------- #
# Fused kernel: all LSTM layers + the Linear head in one pallas_call
# --------------------------------------------------------------------------- #
def fused_decoder_kernel(x_ref,        # (B, K_pad)          layer-0 input (zero-padded)
                         h0_ref,       # (1, B, H)           this layer's h0
                         c0_ref,       # (1, B, H)           this layer's c0
                         w_ref,        # (1, K_pad + H, 4H)  [W_ih; W_hh] pre-transposed
                         b_ref,        # (1, 1, 4H)          b_ih + b_hh
                         wout_ref,     # (H, I)              Linear weight (pre-T)
                         bout_ref,     # (1, I)              Linear bias
                         out_ref,      # (B, I)              decoder output
                         hn_ref,       # (1, B, H)           h_n for this layer
                         cn_ref,       # (1, B, H)           c_n for this layer
                         inp_scratch): # VMEM (B, K_pad)     running layer input
    layer = pl.program_id(0)
    last = pl.num_programs(0) - 1
    H = h0_ref.shape[-1]

    # Layer 0: seed the running input with x (already zero-padded to K_pad).
    @pl.when(layer == 0)
    def _():
        inp_scratch[...] = x_ref[...]

    h_prev = h0_ref[0]
    c_prev = c0_ref[0]

    # One MXU matmul per layer: gates = [x, h] @ [W_ih; W_hh]^T + (b_ih + b_hh).
    xh = jnp.concatenate([inp_scratch[...], h_prev], axis=-1)   # (B, K_pad + H)
    gates = (jnp.dot(xh, w_ref[0], preferred_element_type=jnp.float32)
             + b_ref[0])                                        # (B, 4H)

    # PyTorch gate order: i, f, g, o.
    # TODO(synk): for production H (H % 128 != 0) these slices cut inside a
    # vreg; pad H to a multiple of 128 (or lane-align gate blocks) when scaling.
    i_g = jax.nn.sigmoid(gates[:, 0 * H:1 * H])
    f_g = jax.nn.sigmoid(gates[:, 1 * H:2 * H])
    g_g = jnp.tanh(gates[:, 2 * H:3 * H])
    o_g = jax.nn.sigmoid(gates[:, 3 * H:4 * H])
    c_new = f_g * c_prev + i_g * g_g
    h_new = o_g * jnp.tanh(c_new)

    hn_ref[0] = h_new.astype(hn_ref.dtype)
    cn_ref[0] = c_new.astype(cn_ref.dtype)

    # Next layer's input. Columns [H:K_pad] of the scratch multiply zero
    # weight rows for layers > 0, so they may stay stale.
    inp_scratch[:, :H] = h_new

    # Linear head on the top layer's h (output block is grid-resident and is
    # written back to HBM once, after the last grid step).
    @pl.when(layer == last)
    def _():
        out_ref[...] = (jnp.dot(h_new, wout_ref[...],
                                preferred_element_type=jnp.float32)
                        + bout_ref[...]).astype(out_ref.dtype)


# --------------------------------------------------------------------------- #
# Wrapper
# --------------------------------------------------------------------------- #
def lstm_decoder_forward(params, x, encoder_hidden_states):
    """Exactly LSTM_decoder.forward (seq_len == 1). Returns (output, (h_n, c_n))."""
    h0, c0 = encoder_hidden_states                 # (L, B, H) each
    L, B, H = h0.shape
    I = x.shape[-1]
    w_stacked = params["w_stacked"]                # (L, K_pad + H, 4H)
    b_stacked = params["b_stacked"]                # (L, 1, 4H)
    K_pad = w_stacked.shape[1] - H

    # Zero-pad the layer-0 input to the common (padded) K dimension.
    x_pad = jnp.zeros((B, K_pad), x.dtype).at[:, :I].set(x)

    out, h_n, c_n = pl.pallas_call(
        fused_decoder_kernel,
        grid=(L,),
        in_specs=[
            pl.BlockSpec((B, K_pad), lambda l: (0, 0)),               # x_pad (resident)
            pl.BlockSpec((1, B, H), lambda l: (l, 0, 0)),             # h0[l]
            pl.BlockSpec((1, B, H), lambda l: (l, 0, 0)),             # c0[l]
            pl.BlockSpec((1, K_pad + H, 4 * H), lambda l: (l, 0, 0)), # stacked weights
            pl.BlockSpec((1, 1, 4 * H), lambda l: (l, 0, 0)),         # stacked biases
            pl.BlockSpec((H, I), lambda l: (0, 0)),                   # W_out^T (resident)
            pl.BlockSpec((1, I), lambda l: (0, 0)),                   # b_out   (resident)
        ],
        out_specs=(
            pl.BlockSpec((B, I), lambda l: (0, 0)),                   # output (last step)
            pl.BlockSpec((1, B, H), lambda l: (l, 0, 0)),             # h_n[l]
            pl.BlockSpec((1, B, H), lambda l: (l, 0, 0)),             # c_n[l]
        ),
        out_shape=(
            jax.ShapeDtypeStruct((B, I), jnp.float32),
            jax.ShapeDtypeStruct((L, B, H), jnp.float32),
            jax.ShapeDtypeStruct((L, B, H), jnp.float32),
        ),
        scratch_shapes=[pltpu.VMEM((B, K_pad), jnp.float32)],
        compiler_params=pltpu.CompilerParams(
            dimension_semantics=("arbitrary",)),
    )(x_pad, h0, c0, w_stacked, b_stacked, params["w_out_t"], params["b_out"])
    return out, (h_n, c_n)


# --------------------------------------------------------------------------- #
# Parameter init (deterministic, PyTorch-style uniform(-1/sqrt(H), 1/sqrt(H)))
# --------------------------------------------------------------------------- #
def init_params(key, input_size, hidden_size, num_layers):
    H = hidden_size
    k = 1.0 / math.sqrt(H)
    K_pad = max(input_size, H)
    raw, w_cat, b_cat = [], [], []
    for l in range(num_layers):
        in_l = input_size if l == 0 else H
        key, k1, k2, k3, k4 = jax.random.split(key, 5)
        w_ih = jax.random.uniform(k1, (4 * H, in_l), jnp.float32, -k, k)
        w_hh = jax.random.uniform(k2, (4 * H, H), jnp.float32, -k, k)
        b_ih = jax.random.uniform(k3, (4 * H,), jnp.float32, -k, k)
        b_hh = jax.random.uniform(k4, (4 * H,), jnp.float32, -k, k)
        raw.append((w_ih, w_hh, b_ih, b_hh))
        # [W_ih^T (K zero-padded to K_pad); W_hh^T]  -> (K_pad + H, 4H)
        w_ih_t = jnp.zeros((K_pad, 4 * H), jnp.float32).at[:in_l, :].set(w_ih.T)
        w_cat.append(jnp.concatenate([w_ih_t, w_hh.T], axis=0))
        b_cat.append((b_ih + b_hh)[None, :])
    key, k1, k2 = jax.random.split(key, 3)
    w_out = jax.random.uniform(k1, (input_size, H), jnp.float32, -k, k)
    b_out = jax.random.uniform(k2, (input_size,), jnp.float32, -k, k)
    return {
        "layers_raw": raw,                          # for the pure-JAX reference
        "w_stacked": jnp.stack(w_cat, axis=0),      # (L, K_pad + H, 4H)
        "b_stacked": jnp.stack(b_cat, axis=0),      # (L, 1, 4H)
        "w_out_t": w_out.T,                         # (H, input_size)
        "b_out": b_out[None, :],                    # (1, input_size)
    }


# --------------------------------------------------------------------------- #
# Pure-JAX reference (PyTorch nn.LSTM / nn.Linear semantics)
# --------------------------------------------------------------------------- #
def lstm_decoder_reference(params, x, encoder_hidden_states):
    h0, c0 = encoder_hidden_states
    H = h0.shape[-1]
    inp = x
    h_list, c_list = [], []
    for l, (w_ih, w_hh, b_ih, b_hh) in enumerate(params["layers_raw"]):
        gates = inp @ w_ih.T + h0[l] @ w_hh.T + b_ih + b_hh
        i_g = jax.nn.sigmoid(gates[:, 0 * H:1 * H])
        f_g = jax.nn.sigmoid(gates[:, 1 * H:2 * H])
        g_g = jnp.tanh(gates[:, 2 * H:3 * H])
        o_g = jax.nn.sigmoid(gates[:, 3 * H:4 * H])
        c_new = f_g * c0[l] + i_g * g_g
        h_new = o_g * jnp.tanh(c_new)
        h_list.append(h_new)
        c_list.append(c_new)
        inp = h_new
    out = inp @ params["w_out_t"] + params["b_out"]
    return out, (jnp.stack(h_list, 0), jnp.stack(c_list, 0))


# --------------------------------------------------------------------------- #
if __name__ == "__main__":
    batch = 2
    input_size = 16
    hidden_size = 32
    num_layers = 2

    key = jax.random.PRNGKey(0)
    key, kx, kh, kc, kp = jax.random.split(key, 5)

    x = jax.random.normal(kx, (batch, input_size), jnp.float32)
    h0 = jax.random.normal(kh, (num_layers, batch, hidden_size), jnp.float32)
    c0 = jax.random.normal(kc, (num_layers, batch, hidden_size), jnp.float32)
    params = init_params(kp, input_size, hidden_size, num_layers)

    output, (h_n, c_n) = lstm_decoder_forward(params, x, (h0, c0))
    jax.block_until_ready((output, h_n, c_n))

    assert output.shape == (batch, input_size)
    assert h_n.shape == (num_layers, batch, hidden_size)
    assert c_n.shape == (num_layers, batch, hidden_size)

    # Correctness check against a pure-JAX reference.
    ref_out, (ref_h, ref_c) = lstm_decoder_reference(params, x, (h0, c0))
    err = max(float(jnp.max(jnp.abs(a - b)))
              for a, b in ((output, ref_out), (h_n, ref_h), (c_n, ref_c)))
    assert err < 1e-3, f"mismatch vs reference: max abs err = {err}"

    print("KERNEL_OK")
</pallas_src>

<mosaic_0001>
module attributes {stable_mosaic.version = 11 : i64} {
  func.func @fused_decoder_kernel(%arg0: i32, %arg1: memref<2x32xf32, #tpu.memory_space<vmem>>, %arg2: memref<1x2x32xf32, #tpu.memory_space<vmem>>, %arg3: memref<1x2x32xf32, #tpu.memory_space<vmem>>, %arg4: memref<1x64x128xf32, #tpu.memory_space<vmem>>, %arg5: memref<1x1x128xf32, #tpu.memory_space<vmem>>, %arg6: memref<32x16xf32, #tpu.memory_space<vmem>>, %arg7: memref<1x16xf32, #tpu.memory_space<vmem>>, %arg8: memref<2x16xf32, #tpu.memory_space<vmem>>, %arg9: memref<1x2x32xf32, #tpu.memory_space<vmem>>, %arg10: memref<1x2x32xf32, #tpu.memory_space<vmem>>, %arg11: memref<2x32xf32, #tpu.memory_space<vmem>>) attributes {dimension_semantics = [#tpu.dimension_semantics<arbitrary>], iteration_bounds = array<i64: 2>, scalar_prefetch = 0 : i64, scratch_operands = 1 : i64, tpu.core_type = #tpu.core_type<tc>, window_params = [{pipeline_mode = #tpu.pipeline_mode<synchronous>, transform_indices = @transform_0, window_bounds = array<i64: 2, 32>}, {transform_indices = @transform_1, window_bounds = array<i64: 1, 2, 32>}, {transform_indices = @transform_2, window_bounds = array<i64: 1, 2, 32>}, {transform_indices = @transform_3, window_bounds = array<i64: 1, 64, 128>}, {transform_indices = @transform_4, window_bounds = array<i64: 1, 1, 128>}, {pipeline_mode = #tpu.pipeline_mode<synchronous>, transform_indices = @transform_5, window_bounds = array<i64: 32, 16>}, {pipeline_mode = #tpu.pipeline_mode<synchronous>, transform_indices = @transform_6, window_bounds = array<i64: 1, 16>}, {pipeline_mode = #tpu.pipeline_mode<synchronous>, transform_indices = @transform_7, window_bounds = array<i64: 2, 16>}, {transform_indices = @transform_8, window_bounds = array<i64: 1, 2, 32>}, {transform_indices = @transform_9, window_bounds = array<i64: 1, 2, 32>}]} {
    %c0_i32 = arith.constant 0 : i32
    %0 = arith.cmpi eq, %arg0, %c0_i32 : i32
    %1 = arith.extui %0 : i1 to i32
    %c0_i32_0 = arith.constant 0 : i32
    %2 = arith.cmpi ne, %1, %c0_i32_0 : i32
    scf.if %2 {
      %c0_26 = arith.constant 0 : index
      %c0_27 = arith.constant 0 : index
      %51 = vector.load %arg1[%c0_26, %c0_27] : memref<2x32xf32, #tpu.memory_space<vmem>>, vector<2x32xf32>
      %c0_28 = arith.constant 0 : index
      %c0_29 = arith.constant 0 : index
      %52 = vector.load %arg11[%c0_28, %c0_29] : memref<2x32xf32, #tpu.memory_space<vmem>>, vector<2x32xf32>
      tpu.vector_store %arg11[%c0_28, %c0_29], %51 {strides = array<i32>} : memref<2x32xf32, #tpu.memory_space<vmem>>, vector<2x32xf32>,
    } else {
    }
    %c0 = arith.constant 0 : index
    %c0_1 = arith.constant 0 : index
    %c0_2 = arith.constant 0 : index
    %3 = vector.load %arg2[%c0, %c0_1, %c0_2] : memref<1x2x32xf32, #tpu.memory_space<vmem>>, vector<1x2x32xf32>
    %4 = vector.shape_cast %3 : vector<1x2x32xf32> to vector<2x32xf32>
    %c0_3 = arith.constant 0 : index
    %c0_4 = arith.constant 0 : index
    %c0_5 = arith.constant 0 : index
    %5 = vector.load %arg3[%c0_3, %c0_4, %c0_5] : memref<1x2x32xf32, #tpu.memory_space<vmem>>, vector<1x2x32xf32>
    %6 = vector.shape_cast %5 : vector<1x2x32xf32> to vector<2x32xf32>
    %c0_6 = arith.constant 0 : index
    %c0_7 = arith.constant 0 : index
    %7 = vector.load %arg11[%c0_6, %c0_7] : memref<2x32xf32, #tpu.memory_space<vmem>>, vector<2x32xf32>
    %8 = tpu.concatenate %7, %4 in 1 : vector<2x32xf32>, vector<2x32xf32> -> vector<2x64xf32>
    %c0_8 = arith.constant 0 : index
    %c0_9 = arith.constant 0 : index
    %c0_10 = arith.constant 0 : index
    %9 = vector.load %arg4[%c0_8, %c0_9, %c0_10] : memref<1x64x128xf32, #tpu.memory_space<vmem>>, vector<1x64x128xf32>
    %10 = vector.shape_cast %9 : vector<1x64x128xf32> to vector<64x128xf32>
    %cst = arith.constant dense<0.000000e+00> : vector<2x128xf32>
    %11 = tpu.matmul %8, %10, %cst {dimension_numbers = #tpu.dot_dimension_numbers<[1], [0], [0], [1], [0, 0, 1, 1], [], []>} : vector<2x64xf32>, vector<64x128xf32>, vector<2x128xf32> -> vector<2x128xf32>
    %c0_11 = arith.constant 0 : index
    %c0_12 = arith.constant 0 : index
    %c0_13 = arith.constant 0 : index
    %12 = vector.load %arg5[%c0_11, %c0_12, %c0_13] : memref<1x1x128xf32, #tpu.memory_space<vmem>>, vector<1x1x128xf32>
    %13 = vector.shape_cast %12 : vector<1x1x128xf32> to vector<1x128xf32>
    %14 = vector.broadcast %13 : vector<1x128xf32> to vector<2x128xf32>
    %15 = arith.addf %11, %14 : vector<2x128xf32>
    %16 = vector.extract_strided_slice %15 {offsets = [0, 0], sizes = [2, 32], strides = [1, 1]} : vector<2x128xf32> to vector<2x32xf32>
    %17 = arith.negf %16 : vector<2x32xf32>
    %18 = math.exp %17 : vector<2x32xf32>
    %cst_14 = arith.constant 1.000000e+00 : f32
    %19 = vector.broadcast %cst_14 : f32 to vector<2x32xf32>
    %20 = arith.addf %19, %18 : vector<2x32xf32>
    %21 = arith.divf %19, %20 : vector<2x32xf32>
    %22 = vector.extract_strided_slice %15 {offsets = [0, 32], sizes = [2, 32], strides = [1, 1]} : vector<2x128xf32> to vector<2x32xf32>
    %23 = arith.negf %22 : vector<2x32xf32>
    %24 = math.exp %23 : vector<2x32xf32>
    %cst_15 = arith.constant 1.000000e+00 : f32
    %25 = vector.broadcast %cst_15 : f32 to vector<2x32xf32>
    %26 = arith.addf %25, %24 : vector<2x32xf32>
    %27 = arith.divf %25, %26 : vector<2x32xf32>
    %28 = vector.extract_strided_slice %15 {offsets = [0, 64], sizes = [2, 32], strides = [1, 1]} : vector<2x128xf32> to vector<2x32xf32>
    %29 = math.tanh %28 : vector<2x32xf32>
    %30 = vector.extract_strided_slice %15 {offsets = [0, 96], sizes = [2, 32], strides = [1, 1]} : vector<2x128xf32> to vector<2x32xf32>
    %31 = arith.negf %30 : vector<2x32xf32>
    %32 = math.exp %31 : vector<2x32xf32>
    %cst_16 = arith.constant 1.000000e+00 : f32
    %33 = vector.broadcast %cst_16 : f32 to vector<2x32xf32>
    %34 = arith.addf %33, %32 : vector<2x32xf32>
    %35 = arith.divf %33, %34 : vector<2x32xf32>
    %36 = arith.mulf %27, %6 : vector<2x32xf32>
    %37 = arith.mulf %21, %29 : vector<2x32xf32>
    %38 = arith.addf %36, %37 : vector<2x32xf32>
    %39 = math.tanh %38 : vector<2x32xf32>
    %40 = arith.mulf %35, %39 : vector<2x32xf32>
    %c0_17 = arith.constant 0 : index
    %c0_18 = arith.constant 0 : index
    %c0_19 = arith.constant 0 : index
    %41 = vector.load %arg9[%c0_17, %c0_18, %c0_19] : memref<1x2x32xf32, #tpu.memory_space<vmem>>, vector<1x2x32xf32>
    %42 = vector.shape_cast %41 : vector<1x2x32xf32> to vector<2x32xf32>
    %43 = vector.shape_cast %40 : vector<2x32xf32> to vector<1x2x32xf32>
    tpu.vector_store %arg9[%c0_17, %c0_18, %c0_19], %43 {strides = array<i32>} : memref<1x2x32xf32, #tpu.memory_space<vmem>>, vector<1x2x32xf32>,
    %c0_20 = arith.constant 0 : index
    %c0_21 = arith.constant 0 : index
    %c0_22 = arith.constant 0 : index
    %44 = vector.load %arg10[%c0_20, %c0_21, %c0_22] : memref<1x2x32xf32, #tpu.memory_space<vmem>>, vector<1x2x32xf32>
    %45 = vector.shape_cast %44 : vector<1x2x32xf32> to vector<2x32xf32>
    %46 = vector.shape_cast %38 : vector<2x32xf32> to vector<1x2x32xf32>
    tpu.vector_store %arg10[%c0_20, %c0_21, %c0_22], %46 {strides = array<i32>} : memref<1x2x32xf32, #tpu.memory_space<vmem>>, vector<1x2x32xf32>,
    %c0_23 = arith.constant 0 : index
    %c0_24 = arith.constant 0 : index
    %47 = vector.load %arg11[%c0_23, %c0_24] : memref<2x32xf32, #tpu.memory_space<vmem>>, vector<2x32xf32>
    tpu.vector_store %arg11[%c0_23, %c0_24], %40 {strides = array<i32>} : memref<2x32xf32, #tpu.memory_space<vmem>>, vector<2x32xf32>,
    %c1_i32 = arith.constant 1 : i32
    %48 = arith.cmpi eq, %arg0, %c1_i32 : i32
    %49 = arith.extui %48 : i1 to i32
    %c0_i32_25 = arith.constant 0 : i32
    %50 = arith.cmpi ne, %49, %c0_i32_25 : i32
    scf.if %50 {
      %c0_26 = arith.constant 0 : index
      %c0_27 = arith.constant 0 : index
      %51 = vector.load %arg6[%c0_26, %c0_27] : memref<32x16xf32, #tpu.memory_space<vmem>>, vector<32x16xf32>
      %cst_28 = arith.constant dense<0.000000e+00> : vector<2x16xf32>
      %52 = tpu.matmul %40, %51, %cst_28 {dimension_numbers = #tpu.dot_dimension_numbers<[1], [0], [0], [1], [0, 0, 1, 1], [], []>} : vector<2x32xf32>, vector<32x16xf32>, vector<2x16xf32> -> vector<2x16xf32>
      %c0_29 = arith.constant 0 : index
      %c0_30 = arith.constant 0 : index
      %53 = vector.load %arg7[%c0_29, %c0_30] : memref<1x16xf32, #tpu.memory_space<vmem>>, vector<1x16xf32>
      %54 = vector.broadcast %53 : vector<1x16xf32> to vector<2x16xf32>
      %55 = arith.addf %52, %54 : vector<2x16xf32>
      %c0_31 = arith.constant 0 : index
      %c0_32 = arith.constant 0 : index
      %56 = vector.load %arg8[%c0_31, %c0_32] : memref<2x16xf32, #tpu.memory_space<vmem>>, vector<2x16xf32>
      tpu.vector_store %arg8[%c0_31, %c0_32], %55 {strides = array<i32>} : memref<2x16xf32, #tpu.memory_space<vmem>>, vector<2x16xf32>,
    } else {
    }
    return
  }
  func.func @transform_0(%arg0: i32) -> (i32, i32) {
    %c0_i32 = arith.constant 0 : i32
    %c0_i32_0 = arith.constant 0 : i32
    %c0_i32_1 = arith.constant 0 : i32
    return %c0_i32, %c0_i32_0 : i32, i32
  }
  func.func @transform_1(%arg0: i32) -> (i32, i32, i32) {
    %c0_i32 = arith.constant 0 : i32
    %c0_i32_0 = arith.constant 0 : i32
    %c0_i32_1 = arith.constant 0 : i32
    return %arg0, %c0_i32, %c0_i32_0 : i32, i32, i32
  }
  func.func @transform_2(%arg0: i32) -> (i32, i32, i32) {
    %c0_i32 = arith.constant 0 : i32
    %c0_i32_0 = arith.constant 0 : i32
    %c0_i32_1 = arith.constant 0 : i32
    return %arg0, %c0_i32, %c0_i32_0 : i32, i32, i32
  }
  func.func @transform_3(%arg0: i32) -> (i32, i32, i32) {
    %c0_i32 = arith.constant 0 : i32
    %c0_i32_0 = arith.constant 0 : i32
    %c0_i32_1 = arith.constant 0 : i32
    return %arg0, %c0_i32, %c0_i32_0 : i32, i32, i32
  }
  func.func @transform_4(%arg0: i32) -> (i32, i32, i32) {
    %c0_i32 = arith.constant 0 : i32
    %c0_i32_0 = arith.constant 0 : i32
    %c0_i32_1 = arith.constant 0 : i32
    return %arg0, %c0_i32, %c0_i32_0 : i32, i32, i32
  }
  func.func @transform_5(%arg0: i32) -> (i32, i32) {
    %c0_i32 = arith.constant 0 : i32
    %c0_i32_0 = arith.constant 0 : i32
    %c0_i32_1 = arith.constant 0 : i32
    return %c0_i32, %c0_i32_0 : i32, i32
  }
  func.func @transform_6(%arg0: i32) -> (i32, i32) {
    %c0_i32 = arith.constant 0 : i32
    %c0_i32_0 = arith.constant 0 : i32
    %c0_i32_1 = arith.constant 0 : i32
    return %c0_i32, %c0_i32_0 : i32, i32
  }
  func.func @transform_7(%arg0: i32) -> (i32, i32) {
    %c0_i32 = arith.constant 0 : i32
    %c0_i32_0 = arith.constant 0 : i32
    %c0_i32_1 = arith.constant 0 : i32
    return %c0_i32, %c0_i32_0 : i32, i32
  }
  func.func @transform_8(%arg0: i32) -> (i32, i32, i32) {
    %c0_i32 = arith.constant 0 : i32
    %c0_i32_0 = arith.constant 0 : i32
    %c0_i32_1 = arith.constant 0 : i32
    return %arg0, %c0_i32, %c0_i32_0 : i32, i32, i32
  }
  func.func @transform_9(%arg0: i32) -> (i32, i32, i32) {
    %c0_i32 = arith.constant 0 : i32
    %c0_i32_0 = arith.constant 0 : i32
    %c0_i32_1 = arith.constant 0 : i32
    return %arg0, %c0_i32, %c0_i32_0 : i32, i32, i32
  }
}

</mosaic_0001>

<bundles_post_ra>
// kernel: tpu_custom_call.1
= control target key start
LH: loop header
LB: loop body
LE: loop exit
PB: predicated region body
PF: predicated region fallthrough
CT: control target
= control target key end

     0   :  { %s1492_s0 = inlined_call_operand.vmem [shape: f32[2,32], index: 0, kind: input, shape index: {}]   ;;  %s1493_s1 = inlined_call_operand.vmem [shape: f32[2,2,32], index: 1, kind: input, shape index: {}]   ;;  %s1494_s2 = inlined_call_operand.vmem [shape: f32[2,2,32], index: 2, kind: input, shape index: {}]   ;;  %s1495_s3 = inlined_call_operand.hbm [shape: f32[2,64,128], index: 3, kind: input, shape index: {}]   ;;  %s1496_s4 = inlined_call_operand.vmem [shape: f32[2,1,128], index: 4, kind: input, shape index: {}]   ;;  %s1497_s5 = inlined_call_operand.vmem [shape: f32[32,16], index: 5, kind: input, shape index: {}]   ;;  %s1498_s6 = inlined_call_operand.vmem [shape: f32[1,16], index: 6, kind: input, shape index: {}]   ;;  %s1499_s7 = inlined_call_operand.hbm [shape: f32[2,16], index: 7, kind: output, shape index: {0}]   ;;  %s1500_s8 = inlined_call_operand.hbm [shape: f32[2,2,32], index: 8, kind: output, shape index: {1}]   ;;  %s1501_s9 = inlined_call_operand.hbm [shape: f32[2,2,32], index: 9, kind: output, shape index: {2}]  }
   0x1   :  { %1507 = sst [smem:[#allocation16_spill]] %s1495_s3 }
   0x2   :  { %15 = vsyncpa [#allocation4], 0 }
   0x3   :  { %17 = vsyncpa [#allocation4 + $0x1], 0 }
   0x4   :  { %18 = vsyncpa [#allocation5], 0 }
   0x5   :  { %19 = vsyncpa [#allocation8], 0 }
   0x6   :  { %21 = vsyncpa [#allocation8 + $0x1], 0  ;;  %s1215_s30 = smov 0   ;;  %s1217_s10 = smov 0  }
   0x7   :  { %s1219_s11 = smov 0   ;;  %s1221_s12 = smov 0  }
   0x8 LB: > { %1508 = sst [smem:[#allocation13_spill]] %s1140_s10  ;;  %s1234_s13 = sadd.s32 4294967295, %s1148_s12   ;;  %s1148_s12 = sphi %s1221_s12, %s1528_s12   ;;  %s1144_s11 = sphi %s1219_s11, %s1527_s11   ;;  %s1140_s10 = sphi %s1217_s10, %s1526_s10   ;;  %s1136_s30 = sphi %s1215_s30, %s1525_s30  }
   0x9   : > { %1509 = sst [smem:[#allocation14_spill]] %s1144_s11  ;;  %s1504_s14 = sadd.s32 4294967294, %s1148_s12  }
   0xa   : > { %s1238_s15 = sadd.s32 1, %s1148_s12   ;;  %s107_s16 = sadd.s32 1, %s1144_s11 }
   0xb   : > { %s104_s17 = ssub.s32 %s1148_s12, %s1238_s15  ;;  %p114_p0 = scmp.ne.s32.totalorder %s1144_s11, %s1140_s10 }
   0xc   : > { %p105_p1 = scmp.eq.s32.totalorder %s104_s17, 0  ;;  %p115_p2 = scmp.eq.s32.totalorder %s1148_s12, 0 }
   0xd   : > { %p120_p3 = scmp.ne.s32.totalorder %s1140_s10, %s1136_s30  ;;  %p121_p4 = scmp.eq.s32.totalorder %s1234_s13, 0 }
   0xe   : > { %s1249_s18 = scalar_select %p105_p1, %s1144_s11, %s107_s16  }
   0xf   : > { %p1251_p5 = por %p115_p2, %p114_p0  ;;  %p1255_p6 = por %p121_p4, %p120_p3 }
  0x10   : > { %1510 = sst [smem:[#allocation15_spill]] %s1249_s18  ;;  %p1502_p7 = scmp.eq.s32.totalorder %s1234_s13, 1 }
  0x11   : > { %p239_p8 = scmp.eq.s32.totalorder %s1504_s14, 1  ;;  %p938_p10 = scmp.lt.s32.totalorder %s1148_s12, 2 }
  0x12   : > { %p1266_p11 = por %p1502_p7, %p114_p0  ;;  %s308_s23 = sand.u32 1, %s1144_s11  }
  0x13   : > { %p1270_p12 = por %p239_p8, %p120_p3  ;;  %s854_s24 = sshll.u32 %s1148_s12, 10 }
  0x14   : > { %s1513_s21 = scalar_select %p1266_p11, 1, 0 }
  0x15   : > { %s1514_s22 = scalar_select %p1270_p12, 1, 0 }
  0x16   : > { %s830_s25 = sshll.u32 %s308_s23, 6  ;;  %s1515_s3 = sld [smem:[#allocation16_spill]] }
  0x17   : > { %s312_s29 = scalar_lea.vmem [#allocation3], %s830_s25  ;;  %p1283_p13 = pnand %p938_p10, %p1251_p5 }
  0x18   : > { %s319_s30 = sshll.u32 %s312_s29, 4  ;;  %s1289_s17 = scalar_lea.sflag [#allocation4], %s308_s23  ;;  %s1287_s30 = int_to_ptr.vmem [resolvable:$true] %s319_s30 }
  0x19   : > { %p996_p1 = pneg %p1283_p13 }
  0x1c   : > { %s1279_s28 = scalar_lea.hbm %s1515_s3, %s854_s24  ;;  %s999_s25 = scalar_lea.hbm %s1515_s3, 2048 }
  0x1d   : > { %s994_s26 = scalar_lea.hbm %s1279_s28, 1024  ;;  %p1000_p4 = scmp.lt.u32.totalorder %s1279_s28, %s1515_s3 }
  0x1e   : > { %p995_p0 = scmp.ne.s32.totalorder %s1279_s28, %s994_s26  ;;  %p1001_p5 = scmp.lt.u32.totalorder %s999_s25, %s994_s26 }
  0x1f   : > { %p1003_p10 = scmp.lt.u32.totalorder %s994_s26, %s1279_s28 }
  0x20   : > { %p997_p2 = pnand %p996_p1, %p995_p0  ;;  %p1002_p8 = por %p1001_p5, %p1000_p4 }
  0x22   : > { %p998_p3 = pneg %p997_p2  ;;  %p1004_p9 = por %p1003_p10, %p1002_p8 }
  0x24   : > { %p1005_p7 = pnand %p1004_p9, %p998_p3 }
  0x26   : > { %1008 = shalt.err (!%p1005_p7)
}
  0x27   : > { %s1009_s23 = scalar_lea.vmem %s1287_s30, 1024  ;;  %s1150_s24 = smov [#allocation3]  }
  0x28   : > { %p1010_p0 = scmp.ne.s32.totalorder %s1287_s30, %s1009_s23  ;;  %s1014_s19 = sshll.u32 %s1150_s24, 4  ;;  %s1015_s19 = int_to_ptr.vmem [resolvable:$false] %s1014_s19 }
  0x29   : > { %s1016_s27 = scalar_lea.vmem %s1015_s19, 2048  ;;  %p1017_p11 = scmp.lt.s32.totalorder %s1287_s30, %s1015_s19 }
  0x2a   : > { %p1012_p2 = pnand %p1010_p0, %p996_p1  ;;  %p1018_p4 = scmp.lt.s32.totalorder %s1016_s27, %s1009_s23 }
  0x2c   : > { %p1013_p12 = pneg %p1012_p2  ;;  %p1019_p5 = por %p1018_p4, %p1017_p11 }
  0x2e   : > { %p1020_p8 = pnand %p1019_p5, %p1013_p12 }
  0x30   : > { %1023 = shalt.err (!%p1020_p8)
}
  0x31   : > { %s1151_s26 = smov 128   ;;  %s1152_s25 = smov 8  }
  0x32   : > { %930 = dma.hbm_to_vmem [thread:$0]  (!%p1283_p13), %s1279_s28, 1024, %s1287_s30, %s1289_s17, %s1151_s26, %s1151_s26, %s1152_s25  }
  0x33   : > { %p833_p7 = scmp.ge.s32.totalorder %s1148_s12, 1  ;;  %p333_p9 = scmp.lt.s32.totalorder %s1148_s12, 3 }
  0x35   : > { %p334_p1 = pnand %p833_p7, %p333_p9 }
  0x36   : > { %s339_s29 = sand.u32 (!%p334_p1), 1, %s1140_s10  }
  0x37   : > { %337 = sbr.rel (%p334_p1) target bundleno = 1186 (0x4a2), region = 48  ;;  %s834_s23 = sshll.u32 (!%p334_p1), %s339_s29, 6 }
  0x38   : > { %s340_s24 = scalar_lea.sflag (!%p334_p1), [#allocation4], %s339_s29  ;;  %s1320_s19 = scalar_lea.vmem (!%p334_p1), [#allocation3], %s834_s23 }
  0x3e   : > { %1123 = dma.done.wait (%p1255_p6), %s340_s24, 1024  }
  0x3f   : > { %1125 = vsyncadd (%p1255_p6), %s340_s24, 4294966272  ;;  %s835_s16 = sshll.u32 %s339_s29, 1  ;;  %p394_p11 = scmp.lt.s32.totalorder %s1234_s13, 1 }
  0x40   : > { %s1341_s18 = scalar_lea.vmem [#allocation7], %s835_s16  ;;  %s1343_s29 = scalar_lea.vmem [#allocation9], %s835_s16 }
  0x41   : > { %s1328_s28 = scalar_select %p394_p11, %s1234_s13, 1 }
  0x42   : > { %p839_p6 = scmp.ne.s32.totalorder %s1234_s13, 0 }
  0x43   : > { %s837_s30 = sshll.u32 %s1328_s28, 1  ;;  %s404_s26 = scalar_lea.vmem %s1496_s4, %s1328_s28  ;;  %v409_v0 = vld [vmem:[%s1492_s0] sm:$0x3] (!%p839_p6)  ;;  %vm410_vm0 = vcmask (!%p839_p6), 254976  }
  0x44   : > { %s397_s14 = scalar_lea.vmem %s1493_s1, %s837_s30  ;;  %s401_s24 = scalar_lea.vmem %s1494_s2, %s837_s30  ;;  %411 = vst.msk [vmem:[#allocation2] sm:$0x3] (!%p839_p6), %vm410_vm0, %v409_v0 }
  0x45   : > { %408 = sbr.rel (%p839_p6) target bundleno = 76 (0x4c), region = 56 }
  0x4c PF: > { %v412_v1 = vld [vmem:[%s397_s14] sm:$0x3]  ;;  %v421_v2 = vld [vmem:[%s1320_s19] sm:$0xff]  ;;  %v422_v3 = vld [vmem:[%s1320_s19 + $0x8] sm:$0xff]  ;;  %s1153_s3 = smov 32   ;;  %v1154_v4 = vmov 0.0|0.0  }
  0x4d   : > { %416 = vrot.lane.b32.xlu0 %v412_v1, %s1153_s3  ;;  %899 = vmatprep.subr.bf16.mxu0 %v1154_v4  ;;  %v900_v5 = vpack.c.bf16 %v422_v3, %v421_v2  ;;  %v423_v6 = vld [vmem:[%s1320_s19 + $0x10] sm:$0xff]  ;;  %v424_v7 = vld [vmem:[%s1320_s19 + $0x18] sm:$0xff]  ;;  %vm1155_vm1 = vmmov 0   ;;  %v1156_v8 = vmov 0.0   ;;  %v425_v11 = vld [vmem:[%s1320_s19 + $0x20] sm:$0xff]  ;;  %vm419_vm2 = vcmask 261120  }
  0x4e   : > { %885 = vmatprep.mubr.msk.f32.mxu0 %vm1155_vm1, %v1156_v8  ;;  %v903_v9 = vpack.c.bf16 %v424_v7, %v423_v6  ;;  %v413_v10 = vld [vmem:[%s401_s24] sm:$0x3]  ;;  %v426_v12 = vld [vmem:[%s1320_s19 + $0x28] sm:$0xff]  ;;  %v427_v14 = vld [vmem:[%s1320_s19 + $0x30] sm:$0xff]  ;;  %vm436_vm3 = vcmask 523264   ;;  %s1157_s14 = smov 64  }
  0x4f   : > { %901 = vmatpush3.bf16.msra.mxu0 %v900_v5  ;;  %518 = vrot.lane.b32.xlu1 %v413_v10, %s1153_s3  ;;  %v906_v13 = vpack.c.bf16 %v426_v12, %v425_v11  ;;  %v428_v15 = vld [vmem:[%s1320_s19 + $0x38] sm:$0xff]  ;;  %s1158_s19 = smov 96   ;;  %vm542_vm4 = vcmask 254976   ;;  %p843_p12 = scmp.ne.s32.totalorder %s1234_s13, 1 }
  0x50   : > { %902 = vmatprep.subr.bf16.mxu0 %v1154_v4  ;;  %v909_v16 = vpack.c.bf16 %v428_v15, %v427_v14  ;;  %v414_v17 = vld [vmem:[#allocation2] sm:$0x3]  ;;  %v555_v41 = vld [vmem:[%s1497_s5 + $0x8] sm:$0xff] (!%p843_p12)  ;;  %v556_v42 = vld [vmem:[%s1497_s5 + $0x10] sm:$0xff] (!%p843_p12)  ;;  %v1159_v43 = vmov (!%p843_p12), 0.0|0.0   ;;  %vm1160_vm5 = vmmov (!%p843_p12), 0  }
  0x51   : > { %v840_v20 = vld [vmem:[%s404_s26] ss:$0 sm:$0xff]  ;;  %v557_v45 = vld [vmem:[%s1497_s5 + $0x18] sm:$0xff] (!%p843_p12)  ;;  %v1161_v46 = vmov (!%p843_p12), 0.0   ;;  %vm637_vm6 = vcmask (!%p843_p12), 123904  }
  0x52   : > { %v554_v40 = vld [vmem:[%s1497_s5] sm:$0xff] (!%p843_p12)  ;;  %v915_v47 = vpack.c.bf16 (!%p843_p12), %v557_v45, %v556_v42 }
  0x53   : > { %904 = vmatpush3.bf16.msra.mxu0 %v903_v9  ;;  %v912_v44 = vpack.c.bf16 (!%p843_p12), %v555_v41, %v554_v40  ;;  %v844_v48 = vld [vmem:[%s1498_s6] ss:$0 sm:$0xff] (!%p843_p12) }
  0x54   : > { %905 = vmatprep.subr.bf16.mxu0 %v1154_v4 }
  0x57   : > { %907 = vmatpush3.bf16.msra.mxu0 %v906_v13 }
  0x58   : > { %908 = vmatprep.subr.bf16.mxu0 %v1154_v4 }
  0x5b   : > { %910 = vmatpush3.bf16.msra.mxu0 %v909_v16 }
  0x5c   : > { %911 = vmatprep.subr.bf16.mxu0 (!%p843_p12), %v1159_v43 }
  0xbf   : > { %v417_v18 = vpop.permute.xlu0 %416 }
  0xc0   : > { %v420_v19 = vsel %vm419_vm2, %v414_v17, %v417_v18 }
  0xc1   : > { %886 = vmatmul.mubr.msk.f32.vlgmr.msra.gmra.mrb[0].mxu0 %vm436_vm3, %v420_v19  ;;  %v519_v31 = vpop.permute.xlu1 %518 }
  0xc2   : > { %896 = vmatprep.mubr.msk.f32.mxu0 (!%p843_p12), %vm1160_vm5, %v1161_v46  ;;  %913 = vmatpush3.bf16.msra.mxu0 (!%p843_p12), %v912_v44 }
  0xc3   : > { %914 = vmatprep.subr.bf16.mxu0 (!%p843_p12), %v1159_v43 }
  0xc6   : > { %916 = vmatpush3.bf16.msra.mxu0 (!%p843_p12), %v915_v47 }
 0x194   : > { %v506_v21 = vpop.f32.mrb[0].mxu0 }
 0x195   : > { %v507_v22 = vadd.f32 %v840_v20, %v506_v21  ;;  %v887_v23 = vpop.f32.mrb[1].mxu0 }
 0x197   : > { %986 = vtanh.f32 %v507_v22  ;;  %v842_v25 = vmul.f32 -1.442695, %v507_v22 }
 0x199   : > { %988 = vpow2.f32 %v842_v25 }
 0x1a1   : > { %v987_v24 = vpop.eup %986 }
 0x1a2   : > { %523 = vrot.lane.b32.xlu0 %v987_v24, %s1157_s14 }
 0x1a3   : > { %v989_v26 = vpop.eup %988 }
 0x1a4   : > { %v513_v27 = vadd.f32 1.0, %v989_v26 }
 0x1a6   : > { %990 = vrcp.f32 %v513_v27 }
 0x1b0   : > { %v991_v28 = vpop.eup %990 }
 0x1b1   : > { %v521_v32 = vmul.f32 %v991_v28, %v519_v31 }
 0x214   : > { %v524_v29 = vpop.permute.xlu0 %523 }
 0x215   : > { %v526_v30 = vmul.f32 %v991_v28, %v524_v29 }
 0x217   : > { %528 = vrot.lane.b32.xlu1 %v526_v30, %s1153_s3 }
 0x289   : > { %v529_v33 = vpop.permute.xlu1 %528 }
 0x28a   : > { %v531_v34 = vadd.f32 %v529_v33, %v521_v32 }
 0x28c   : > { %992 = vtanh.f32 %v531_v34 }
 0x296   : > { %v993_v35 = vpop.eup %992 }
 0x297   : > { %534 = vrot.lane.b32.xlu0 %v993_v35, %s1157_s14 }
 0x29b   : > { %545 = vrot.lane.b32.xlu0 %v531_v34, %s1158_s19 }
 0x309   : > { %v535_v36 = vpop.permute.xlu0 %534 }
 0x30a   : > { %v537_v37 = vmul.f32 %v991_v28, %v535_v36 }
 0x30c   : > { %539 = vrot.lane.b32.xlu1 %v537_v37, %s1153_s3 }
 0x30d   : > { %v546_v38 = vpop.permute.xlu0 %545 }
 0x30e   : > { %548 = vst.msk [vmem:[%s1343_s29] sm:$0x3] %vm542_vm4, %v546_v38 }
 0x379   : > { %553 = sbr.rel (%p843_p12) target bundleno = 1110 (0x456), region = 60 }
 0x37e   : > { %v540_v39 = vpop.permute.xlu1 %539 }
 0x37f   : > { %543 = vst.msk [vmem:[%s1341_s18] sm:$0x3] %vm542_vm4, %v540_v39  ;;  %549 = vst.msk [vmem:[#allocation2] sm:$0x3] %vm542_vm4, %v540_v39  ;;  %897 = vmatmul.mubr.msk.f32.vlgmr.msra.gmra.mrb[0].mxu0 (!%p843_p12), %vm419_vm2, %v540_v39 }
 0x452   : > { %v633_v49 = vpop.f32.mrb[0].mxu0 }
 0x453   : > { %v634_v50 = vadd.f32 %v844_v48, %v633_v49  ;;  %v898_v51 = vpop.f32.mrb[1].mxu0 }
 0x455   : > { %638 = vst.msk [vmem:[#allocation6] sm:$0x3] %vm637_vm6, %v634_v50 }
 0x456 PF: > { %s639_s3 = sand.u32 1, %s1234_s13   ;;  %s849_s10 = sshll.u32 %s1234_s13, 5 }
 0x457   : > { %s1393_s19 = scalar_lea.hbm %s1500_s8, %s849_s10  ;;  %s669_s16 = sshll.u32 %s1341_s18, 4  ;;  %s1396_s16 = int_to_ptr.vmem [resolvable:$true] %s669_s16 }
 0x458   : > { %s1162_s28 = smov [#allocation6]   ;;  %s1400_s17 = scalar_lea.sflag [#allocation8], %s639_s3 }
 0x459   : > { %s1398_s30 = sshll.u32 %s1162_s28, 4  ;;  %s1024_s27 = scalar_lea.vmem %s1396_s16, 32  ;;  %s657_s30 = int_to_ptr.vmem [resolvable:$true] %s1398_s30 }
 0x45a   : > { %p1025_p13 = scmp.ne.s32.totalorder %s1396_s16, %s1024_s27  ;;  %p1517_p3 = scmp.ne.s32.totalorder %s1513_s21, 0 }
 0x45b   : > { %s1163_s26 = smov [#allocation7]  }
 0x45c   : > { %p1026_p10 = pnand %p1025_p13, %p1517_p3  ;;  %s1028_s25 = sshll.u32 %s1163_s26, 4  ;;  %s1029_s25 = int_to_ptr.vmem [resolvable:$false] %s1028_s25 }
 0x45d   : > { %s1030_s23 = scalar_lea.vmem %s1029_s25, 64  ;;  %p1031_p2 = scmp.lt.s32.totalorder %s1396_s16, %s1029_s25 }
 0x45e   : > { %p1027_p0 = pneg %p1026_p10  ;;  %p1032_p4 = scmp.lt.s32.totalorder %s1030_s23, %s1024_s27 }
 0x460   : > { %p1033_p5 = por %p1032_p4, %p1031_p2 }
 0x462   : > { %p1034_p8 = pnand %p1033_p5, %p1027_p0 }
 0x464   : > { %1037 = shalt.err (!%p1034_p8)
}
 0x465   : > { %s1038_s18 = scalar_lea.hbm %s1393_s19, 32  ;;  %s1042_s3 = scalar_lea.hbm %s1500_s8, 64 }
 0x466   : > { %p1039_p7 = scmp.ne.s32.totalorder %s1393_s19, %s1038_s18  ;;  %p1043_p11 = scmp.lt.u32.totalorder %s1393_s19, %s1500_s8 }
 0x467   : > { %p1044_p6 = scmp.lt.u32.totalorder %s1042_s3, %s1038_s18  ;;  %p1046_p13 = scmp.lt.u32.totalorder %s1038_s18, %s1393_s19 }
 0x468   : > { %p1040_p9 = pnand %p1039_p7, %p1517_p3 }
 0x469   : > { %p1045_p12 = por %p1044_p6, %p1043_p11 }
 0x46a   : > { %p1041_p1 = pneg %p1040_p9 }
 0x46b   : > { %p1047_p10 = por %p1046_p13, %p1045_p12 }
 0x46d   : > { %p1048_p0 = pnand %p1047_p10, %p1041_p1 }
 0x46f   : > { %1051 = shalt.err (!%p1048_p0)
}
 0x470   : > { %921 = dma.vmem_to_hbm [thread:$0]  (%p1517_p3), %s1396_s16, 32, %s1393_s19, %s1400_s17  }
 0x471   : > { %s1430_s26 = scalar_lea.hbm %s1501_s9, %s849_s10  ;;  %s1052_s25 = scalar_lea.vmem %s657_s30, 32 }
 0x472   : > { %p1053_p2 = scmp.ne.s32.totalorder %s657_s30, %s1052_s25  ;;  %p1518_p4 = scmp.eq.s32.totalorder %s1234_s13, 1 }
 0x473   : > { %p1059_p7 = scmp.lt.s32.totalorder %s657_s30, %s657_s30  ;;  %p1060_p9 = scmp.lt.s32.totalorder %s1052_s25, %s1052_s25 }
 0x474   : > { %p1054_p5 = pnand %p1053_p2, %p1518_p4 }
 0x475   : > { %p1061_p1 = por %p1060_p9, %p1059_p7 }
 0x476   : > { %p1055_p8 = pneg %p1054_p5 }
 0x478   : > { %p1062_p11 = pnand %p1061_p1, %p1055_p8 }
 0x47a   : > { %1065 = shalt.err (!%p1062_p11)
}
 0x47b   : > { %s1066_s19 = scalar_lea.hbm %s1499_s7, 32  ;;  %p1519_p12 = pmov %p1518_p4 }
 0x47c   : > { %p1067_p6 = scmp.ne.s32.totalorder %s1499_s7, %s1066_s19  ;;  %p1072_p0 = scmp.lt.u32.totalorder %s1066_s19, %s1499_s7 }
 0x47e   : > { %p1068_p13 = pnand %p1067_p6, %p1519_p12 }
 0x480   : > { %p1069_p10 = pneg %p1068_p13 }
 0x482   : > { %p1074_p2 = pnand %p1072_p0, %p1069_p10 }
 0x484   : > { %1077 = shalt.err (!%p1074_p2)
}
 0x485   : > { %920 = dma.vmem_to_hbm [thread:$0]  (%p1518_p4), %s657_s30, 32, %s1499_s7, [#allocation5]  }
 0x486   : > { %s682_s14 = sshll.u32 %s1343_s29, 4  ;;  %s1164_s27 = smov [#allocation9]   ;;  %s683_s14 = int_to_ptr.vmem [resolvable:$true] %s682_s14 }
 0x487   : > { %s1078_s28 = scalar_lea.vmem %s683_s14, 32  ;;  %s1082_s25 = sshll.u32 %s1164_s27, 4  ;;  %s1083_s25 = int_to_ptr.vmem [resolvable:$false] %s1082_s25 }
 0x488   : > { %p1079_p5 = scmp.ne.s32.totalorder %s683_s14, %s1078_s28  ;;  %s1084_s23 = scalar_lea.vmem %s1083_s25, 64 }
 0x489   : > { %p1085_p9 = scmp.lt.s32.totalorder %s683_s14, %s1083_s25  ;;  %p1086_p1 = scmp.lt.s32.totalorder %s1084_s23, %s1078_s28 }
 0x48a   : > { %p1080_p8 = pnand %p1079_p5, %p1517_p3 }
 0x48b   : > { %p1087_p11 = por %p1086_p1, %p1085_p9 }
 0x48c   : > { %p1081_p7 = pneg %p1080_p8 }
 0x48e   : > { %p1088_p6 = pnand %p1087_p11, %p1081_p7 }
 0x490   : > { %1091 = shalt.err (!%p1088_p6)
}
 0x491   : > { %s1092_s29 = scalar_lea.hbm %s1430_s26, 32  ;;  %s1096_s19 = scalar_lea.hbm %s1501_s9, 64 }
 0x492   : > { %p1093_p12 = scmp.ne.s32.totalorder %s1430_s26, %s1092_s29  ;;  %p1097_p0 = scmp.lt.u32.totalorder %s1430_s26, %s1501_s9 }
 0x493   : > { %p1098_p2 = scmp.lt.u32.totalorder %s1096_s19, %s1092_s29  ;;  %p1100_p5 = scmp.lt.u32.totalorder %s1092_s29, %s1430_s26 }
 0x494   : > { %p1094_p13 = pnand %p1093_p12, %p1517_p3 }
 0x495   : > { %p1099_p4 = por %p1098_p2, %p1097_p0 }
 0x496   : > { %p1095_p10 = pneg %p1094_p13 }
 0x497   : > { %p1101_p8 = por %p1100_p5, %p1099_p4 }
 0x499   : > { %p1102_p7 = pnand %p1101_p8, %p1095_p10 }
 0x49b   : > { %1105 = shalt.err (!%p1102_p7)
}
 0x49c   : > { %922 = dma.vmem_to_hbm [thread:$0]  (%p1517_p3), %s683_s14, 32, %s1430_s26, %s1400_s17  }
 0x49d   : > { %p1520_p9 = scmp.eq.s32.totalorder %s1234_s13, 1 }
 0x49f   : > { %1127 = dma.done.wait (%p1520_p9), [#allocation5], 32   ;;  %p1521_p1 = pmov %p1520_p9 }
 0x4a1   : > { %1129 = vsyncadd (%p1521_p1), [#allocation5], 4294967264 }
 0x4a2 PF: > { %s1522_s10 = sadd.s32 4294967294, %s1148_s12   ;;  %p1523_p11 = scmp.ne.s32.totalorder %s1514_s22, 0 }
 0x4a3   : > { %s698_s24 = sand.u32 1, %s1522_s10   ;;  %p1524_p6 = scmp.ge.s32.totalorder %s1148_s12, 2 }
 0x4a4   : > { %s699_s3 = scalar_lea.sflag [#allocation8], %s698_s24 }
 0x4a5   : > { %p932_p12 = pnand %p1524_p6, %p1523_p11 }
 0x4a7   : > { %1131 = dma.done.wait (!%p932_p12), %s699_s3, 64  }
 0x4a8   : > { %1133 = vsyncadd (!%p932_p12), %s699_s3, 4294967232  ;;  %s1525_s30 = sld [smem:[#allocation13_spill]]  ;;  %s1526_s10 = sld [smem:[#allocation14_spill]] }
 0x4a9   : > { %s1527_s11 = sld [smem:[#allocation15_spill]]  ;;  %p24_p3 = scmp.ge.s32.totalorder %s1238_s15, 4  }
 0x4aa   : > { %s1528_s12 = smov %s1238_s15 }
 0x4ab   :  { %26 = sbr.rel (!%p24_p3) target bundleno = 8 (0x8), region = 134 }
 0x4b2   :  { %713 = vsyncpa [#allocation4], 1 }
 0x4b3   :  { %715 = vsyncpa [#allocation4 + $0x1], 1 }
 0x4b4   :  { %716 = vsyncpa [#allocation5], 1 }
 0x4b5   :  { %718 = vsyncpa [#allocation5 + $0x1], 1 }
 0x4b6   :  { %719 = vsyncpa [#allocation8], 1 }
 0x4b7   :  { %721 = vsyncpa [#allocation8 + $0x1], 1 }

</bundles_post_ra>
